<compile_context>
chip_gen: v6e
topology: v6e:2x2x1
jax: 0.10.0
libtpu: 0.0.40
codegen_flags: <defaults>
</compile_context>

<pallas_src>
import jax
import jax.numpy as jnp
from jax import lax
from jax.experimental import pallas as pl
from jax.experimental.pallas import tpu as pltpu


def downsample_forward(x, weight, bias, gamma, beta, running_mean, running_var,
                       stride, padding, eps=1e-5):
    N, C_in, H, W = x.shape
    C_out, _, kh, kw = weight.shape
    sh, sw = stride
    ph, pw = padding
    H_out = (H + 2 * ph - kh) // sh + 1
    W_out = (W + 2 * pw - kw) // sw + 1

    # Stride-phase geometry.
    Hph = H_out + (kh - 1) // sh            # rows per phase
    Wph = W_out + (kw - 1) // sw            # cols per phase
    HWph = Hph * Wph
    HWph_pad = ((HWph + 127) // 128) * 128  # lane-dense per-image spatial width
    Ht, Wt = sh * Hph, sw * Wph             # padded/cropped extent actually used
    n_phase = sh * sw
    na, nb = (kh - 1) // sh + 1, (kw - 1) // sw + 1   # distinct row/col lane shifts
    n_group = na * nb
    K = n_phase * C_in                      # contraction depth per grouped matmul
    Lpad = N * HWph_pad                     # batch folded onto the lane axis

    # --- glue: pad + phase repack (one input-sized copy; no im2col blowup) ---
    xp = jnp.pad(x, ((0, 0), (0, 0),
                     (ph, max(0, Ht - H - ph)),
                     (pw, max(0, Wt - W - pw))))[:, :, :Ht, :Wt]
    xph = xp.reshape(N, C_in, Hph, sh, Wph, sw)
    xph = jnp.transpose(xph, (3, 5, 1, 0, 2, 4))      # (sh, sw, C_in, N, Hph, Wph)
    xph = xph.reshape(K, N, HWph)
    xph = jnp.pad(xph, ((0, 0), (0, 0), (0, HWph_pad - HWph)))
    xph = xph.reshape(K, Lpad).astype(jnp.bfloat16)   # (K, Lpad) lane-dense operand

    # --- fold conv bias + BatchNorm(eval) into weights / per-channel shift ---
    inv_std = 1.0 / jnp.sqrt(running_var.astype(jnp.float32) + eps)
    scale = gamma.astype(jnp.float32) * inv_std                          # (C_out,)
    shift = ((bias.astype(jnp.float32) - running_mean.astype(jnp.float32)) * scale
             + beta.astype(jnp.float32)).reshape(C_out, 1)
    w_bn = weight.astype(jnp.float32) * scale[:, None, None, None]       # BN scale folded
    # Group taps by lane shift (a, b) = (ki//sh, kj//sw); each group becomes one
    # zero-padded (C_out, K) weight block acting on the full phase-stacked slab.
    w_pad = jnp.pad(w_bn, ((0, 0), (0, 0), (0, na * sh - kh), (0, nb * sw - kw)))
    w_pad = w_pad.reshape(C_out, C_in, na, sh, nb, sw)
    wg = jnp.transpose(w_pad, (2, 4, 0, 3, 5, 1)).reshape(n_group, C_out, K)
    wg = wg.astype(jnp.bfloat16)

    def kernel(xph_ref, wg_ref, shift_ref, o_ref):
        # xph_ref: (K, Lpad) bf16   wg_ref: (n_group, C_out, K) bf16
        # shift_ref: (C_out, 1) f32 o_ref: (C_out, Lpad)
        xv = xph_ref[...]
        acc = None
        for g in range(n_group):                          # static, unrolled
            a, b = g // nb, g % nb
            s = a * Wph + b                               # static lane shift
            prod = jnp.dot(wg_ref[g], xv,
                           preferred_element_type=jnp.float32)   # (C_out, Lpad) f32
            if s:
                prod = pltpu.roll(prod, shift=Lpad - s, axis=1)  # == roll by -s
            acc = prod if acc is None else acc + prod
        y = acc + shift_ref[...]
        o_ref[...] = jnp.where(y > 0.0, y, 0.1 * y).astype(o_ref.dtype)

    out_k = pl.pallas_call(
        kernel,
        out_shape=jax.ShapeDtypeStruct((C_out, Lpad), x.dtype),
        grid=(1,),
        in_specs=[
            pl.BlockSpec((K, Lpad), lambda i: (0, 0)),
            pl.BlockSpec((n_group, C_out, K), lambda i: (0, 0, 0)),
            pl.BlockSpec((C_out, 1), lambda i: (0, 0)),
        ],
        out_specs=pl.BlockSpec((C_out, Lpad), lambda i: (0, 0)),
        compiler_params=pltpu.CompilerParams(dimension_semantics=("arbitrary",)),
    )(xph, wg, shift)

    # Valid outputs are the (i < H_out, j < W_out) corner of each image's phase
    # grid; lane padding / roll wrap garbage only lives outside it and is cropped.
    out = out_k.reshape(C_out, N, HWph_pad)
    out = jnp.transpose(out, (1, 0, 2))[:, :, :HWph]
    out = out.reshape(N, C_out, Hph, Wph)[:, :, :H_out, :W_out]
    return out


def _reference(x, weight, bias, gamma, beta, running_mean, running_var,
               stride, padding, eps=1e-5):
    y = lax.conv_general_dilated(
        x, weight, window_strides=stride,
        padding=[(padding[0], padding[0]), (padding[1], padding[1])],
        dimension_numbers=("NCHW", "OIHW", "NCHW"))
    y = y + bias[None, :, None, None]
    inv_std = 1.0 / jnp.sqrt(running_var + eps)
    y = (y - running_mean[None, :, None, None]) * (gamma * inv_std)[None, :, None, None] \
        + beta[None, :, None, None]
    return jnp.where(y > 0, y, 0.1 * y)


if __name__ == "__main__":
    # Module config: DownSample(in_channels=4, out_channels=8, kernel_size=3,
    #                           stride=2, padding=(1, 1))
    in_channels, out_channels = 4, 8
    kernel_size, stride, padding = (3, 3), (2, 2), (1, 1)

    key = jax.random.PRNGKey(0)
    kx, kw_, kb, kg, kbeta, kmu, kvar = jax.random.split(key, 7)

    x = jax.random.normal(kx, (2, in_channels, 16, 16), dtype=jnp.float32)
    weight = 0.1 * jax.random.normal(
        kw_, (out_channels, in_channels, kernel_size[0], kernel_size[1]), dtype=jnp.float32)
    bias = 0.1 * jax.random.normal(kb, (out_channels,), dtype=jnp.float32)
    gamma = 1.0 + 0.1 * jax.random.normal(kg, (out_channels,), dtype=jnp.float32)
    beta = 0.1 * jax.random.normal(kbeta, (out_channels,), dtype=jnp.float32)
    running_mean = 0.1 * jax.random.normal(kmu, (out_channels,), dtype=jnp.float32)
    running_var = 0.5 + jax.random.uniform(kvar, (out_channels,), dtype=jnp.float32)

    out = downsample_forward(x, weight, bias, gamma, beta, running_mean, running_var,
                             stride, padding)
    out = jax.block_until_ready(out)

    ref = _reference(x, weight, bias, gamma, beta, running_mean, running_var,
                     stride, padding)
    assert out.shape == (2, out_channels, 8, 8), out.shape
    assert jnp.allclose(out, ref, atol=1e-2, rtol=1e-2), \
        float(jnp.max(jnp.abs(out - ref)))

    print("KERNEL_OK")
</pallas_src>

<mosaic_0001>
module attributes {stable_mosaic.version = 11 : i64} {
  func.func @kernel(%arg0: i32, %arg1: memref<16x256xbf16, #tpu.memory_space<vmem>>, %arg2: memref<4x8x16xbf16, #tpu.memory_space<vmem>>, %arg3: memref<8x1xf32, #tpu.memory_space<vmem>>, %arg4: memref<8x256xf32, #tpu.memory_space<vmem>>) attributes {dimension_semantics = [#tpu.dimension_semantics<arbitrary>], iteration_bounds = array<i64: 1>, scalar_prefetch = 0 : i64, scratch_operands = 0 : i64, tpu.core_type = #tpu.core_type<tc>, window_params = [{pipeline_mode = #tpu.pipeline_mode<synchronous>, transform_indices = @transform_0, window_bounds = array<i64: 16, 256>}, {pipeline_mode = #tpu.pipeline_mode<synchronous>, transform_indices = @transform_1, window_bounds = array<i64: 4, 8, 16>}, {pipeline_mode = #tpu.pipeline_mode<synchronous>, transform_indices = @transform_2, window_bounds = array<i64: 8, 1>}, {pipeline_mode = #tpu.pipeline_mode<synchronous>, transform_indices = @transform_3, window_bounds = array<i64: 8, 256>}]} {
    %c0 = arith.constant 0 : index
    %c0_0 = arith.constant 0 : index
    %0 = vector.load %arg1[%c0, %c0_0] : memref<16x256xbf16, #tpu.memory_space<vmem>>, vector<16x256xbf16>
    %c0_1 = arith.constant 0 : index
    %c0_2 = arith.constant 0 : index
    %c0_3 = arith.constant 0 : index
    %1 = vector.load %arg2[%c0_1, %c0_2, %c0_3] : memref<4x8x16xbf16, #tpu.memory_space<vmem>>, vector<1x8x16xbf16>
    %2 = vector.shape_cast %1 : vector<1x8x16xbf16> to vector<8x16xbf16>
    %cst = arith.constant dense<0.000000e+00> : vector<8x256xf32>
    %3 = tpu.matmul %2, %0, %cst {dimension_numbers = #tpu.dot_dimension_numbers<[1], [0], [0], [1], [0, 0, 1, 1], [], []>} : vector<8x16xbf16>, vector<16x256xbf16>, vector<8x256xf32> -> vector<8x256xf32>
    %c1 = arith.constant 1 : index
    %c0_4 = arith.constant 0 : index
    %c0_5 = arith.constant 0 : index
    %4 = vector.load %arg2[%c1, %c0_4, %c0_5] : memref<4x8x16xbf16, #tpu.memory_space<vmem>>, vector<1x8x16xbf16>
    %5 = vector.shape_cast %4 : vector<1x8x16xbf16> to vector<8x16xbf16>
    %cst_6 = arith.constant dense<0.000000e+00> : vector<8x256xf32>
    %6 = tpu.matmul %5, %0, %cst_6 {dimension_numbers = #tpu.dot_dimension_numbers<[1], [0], [0], [1], [0, 0, 1, 1], [], []>} : vector<8x16xbf16>, vector<16x256xbf16>, vector<8x256xf32> -> vector<8x256xf32>
    %c255_i32 = arith.constant 255 : i32
    %7 = tpu.dynamic_rotate %6 by %c255_i32 dim 1 : vector<8x256xf32>, i32 -> vector<8x256xf32>
    %8 = arith.addf %3, %7 : vector<8x256xf32>
    %c2 = arith.constant 2 : index
    %c0_7 = arith.constant 0 : index
    %c0_8 = arith.constant 0 : index
    %9 = vector.load %arg2[%c2, %c0_7, %c0_8] : memref<4x8x16xbf16, #tpu.memory_space<vmem>>, vector<1x8x16xbf16>
    %10 = vector.shape_cast %9 : vector<1x8x16xbf16> to vector<8x16xbf16>
    %cst_9 = arith.constant dense<0.000000e+00> : vector<8x256xf32>
    %11 = tpu.matmul %10, %0, %cst_9 {dimension_numbers = #tpu.dot_dimension_numbers<[1], [0], [0], [1], [0, 0, 1, 1], [], []>} : vector<8x16xbf16>, vector<16x256xbf16>, vector<8x256xf32> -> vector<8x256xf32>
    %c247_i32 = arith.constant 247 : i32
    %12 = tpu.dynamic_rotate %11 by %c247_i32 dim 1 : vector<8x256xf32>, i32 -> vector<8x256xf32>
    %13 = arith.addf %8, %12 : vector<8x256xf32>
    %c3 = arith.constant 3 : index
    %c0_10 = arith.constant 0 : index
    %c0_11 = arith.constant 0 : index
    %14 = vector.load %arg2[%c3, %c0_10, %c0_11] : memref<4x8x16xbf16, #tpu.memory_space<vmem>>, vector<1x8x16xbf16>
    %15 = vector.shape_cast %14 : vector<1x8x16xbf16> to vector<8x16xbf16>
    %cst_12 = arith.constant dense<0.000000e+00> : vector<8x256xf32>
    %16 = tpu.matmul %15, %0, %cst_12 {dimension_numbers = #tpu.dot_dimension_numbers<[1], [0], [0], [1], [0, 0, 1, 1], [], []>} : vector<8x16xbf16>, vector<16x256xbf16>, vector<8x256xf32> -> vector<8x256xf32>
    %c246_i32 = arith.constant 246 : i32
    %17 = tpu.dynamic_rotate %16 by %c246_i32 dim 1 : vector<8x256xf32>, i32 -> vector<8x256xf32>
    %18 = arith.addf %13, %17 : vector<8x256xf32>
    %c0_13 = arith.constant 0 : index
    %c0_14 = arith.constant 0 : index
    %19 = vector.load %arg3[%c0_13, %c0_14] : memref<8x1xf32, #tpu.memory_space<vmem>>, vector<8x1xf32>
    %20 = vector.broadcast %19 : vector<8x1xf32> to vector<8x256xf32>
    %21 = arith.addf %18, %20 : vector<8x256xf32>
    %cst_15 = arith.constant 0.000000e+00 : f32
    %22 = vector.broadcast %cst_15 : f32 to vector<8x256xf32>
    %23 = arith.cmpf ogt, %21, %22 : vector<8x256xf32>
    %cst_16 = arith.constant 1.000000e-01 : f32
    %24 = vector.broadcast %cst_16 : f32 to vector<8x256xf32>
    %25 = arith.mulf %24, %21 : vector<8x256xf32>
    %26 = arith.select %23, %21, %25 : vector<8x256xi1>, vector<8x256xf32>
    %c0_17 = arith.constant 0 : index
    %c0_18 = arith.constant 0 : index
    %27 = vector.load %arg4[%c0_17, %c0_18] : memref<8x256xf32, #tpu.memory_space<vmem>>, vector<8x256xf32>
    tpu.vector_store %arg4[%c0_17, %c0_18], %26 {strides = array<i32>} : memref<8x256xf32, #tpu.memory_space<vmem>>, vector<8x256xf32>,
    return
  }
  func.func @transform_0(%arg0: i32) -> (i32, i32) {
    %c0_i32 = arith.constant 0 : i32
    %c0_i32_0 = arith.constant 0 : i32
    %c0_i32_1 = arith.constant 0 : i32
    return %c0_i32, %c0_i32_0 : i32, i32
  }
  func.func @transform_1(%arg0: i32) -> (i32, i32, i32) {
    %c0_i32 = arith.constant 0 : i32
    %c0_i32_0 = arith.constant 0 : i32
    %c0_i32_1 = arith.constant 0 : i32
    %c0_i32_2 = arith.constant 0 : i32
    return %c0_i32, %c0_i32_0, %c0_i32_1 : i32, i32, i32
  }
  func.func @transform_2(%arg0: i32) -> (i32, i32) {
    %c0_i32 = arith.constant 0 : i32
    %c0_i32_0 = arith.constant 0 : i32
    %c0_i32_1 = arith.constant 0 : i32
    return %c0_i32, %c0_i32_0 : i32, i32
  }
  func.func @transform_3(%arg0: i32) -> (i32, i32) {
    %c0_i32 = arith.constant 0 : i32
    %c0_i32_0 = arith.constant 0 : i32
    %c0_i32_1 = arith.constant 0 : i32
    return %c0_i32, %c0_i32_0 : i32, i32
  }
}

</mosaic_0001>

<bundles_post_ra>
// kernel: tpu_custom_call.1
= control target key start
LH: loop header
LB: loop body
LE: loop exit
PB: predicated region body
PF: predicated region fallthrough
CT: control target
= control target key end

     0   :  { %8 = vsyncpa [#allocation3], 0  ;;  %s429_s0 = inlined_call_operand.hbm [shape: bf16[16,256], index: 0, kind: input, shape index: {}]   ;;  %s430_s1 = inlined_call_operand.hbm [shape: bf16[4,8,16], index: 1, kind: input, shape index: {}]   ;;  %s431_s2 = inlined_call_operand.vmem [shape: f32[8,1], index: 2, kind: input, shape index: {}]   ;;  %s432_s3 = inlined_call_operand.hbm [shape: f32[8,256], index: 3, kind: output, shape index: {}]  }
   0x1   :  { %9 = vsyncpa [#allocation6], 0 }
   0x2   :  { %10 = vsyncpa [#allocation4], 0  ;;  %s386_s12 = smov [#allocation2]  }
   0x3   :  { %s16_s13 = sshll.u32 %s386_s12, 4  ;;  %s17_s13 = int_to_ptr.vmem [resolvable:$true] %s16_s13 }
   0x4   :  { %s328_s14 = scalar_lea.vmem %s17_s13, 256  ;;  %p333_p1 = scmp.lt.s32.totalorder %s17_s13, %s17_s13 }
   0x5   :  { %p329_p0 = scmp.ne.s32.totalorder %s17_s13, %s328_s14  ;;  %p334_p2 = scmp.lt.s32.totalorder %s328_s14, %s328_s14 }
   0x7   :  { %p335_p3 = por %p334_p2, %p333_p1 }
   0x9   :  { %p336_p4 = pnand %p335_p3, %p329_p0 }
   0xb   :  { %339 = shalt.err (!%p336_p4)
}
   0xc   :  { %s387_s15 = smov 128   ;;  %s388_s16 = smov 8  }
   0xd   :  { %22 = dma.hbm_to_vmem [thread:$0]  %s429_s0, 256, %s17_s13, [#allocation3], %s387_s15, %s387_s15, %s388_s16  }
   0xe   :  { %s389_s19 = smov [#allocation5]  }
   0xf   :  { %s28_s20 = sshll.u32 %s389_s19, 4  ;;  %s29_s20 = int_to_ptr.vmem [resolvable:$true] %s28_s20 }
  0x10   :  { %s348_s21 = scalar_lea.vmem %s29_s20, 256  ;;  %p353_p6 = scmp.lt.s32.totalorder %s29_s20, %s29_s20 }
  0x11   :  { %p349_p5 = scmp.ne.s32.totalorder %s29_s20, %s348_s21  ;;  %p354_p7 = scmp.lt.s32.totalorder %s348_s21, %s348_s21 }
  0x13   :  { %p355_p8 = por %p354_p7, %p353_p6 }
  0x15   :  { %p356_p9 = pnand %p355_p8, %p349_p5 }
  0x17   :  { %359 = shalt.err (!%p356_p9)
}
  0x18   :  { %s390_s22 = smov 64   ;;  %s391_s23 = smov 4  }
  0x19   :  { %34 = dma.hbm_to_vmem [thread:$0]  %s430_s1, 256, %s29_s20, [#allocation6], %s390_s22, %s390_s22, %s391_s23  }
  0x1a   :  { %380 = dma.done.wait [#allocation3], 256  }
  0x1b   :  { %381 = vsyncadd [#allocation3], 4294967040 }
  0x1c   :  { %382 = dma.done.wait [#allocation6], 256  }
  0x1d   :  { %383 = vsyncadd [#allocation6], 4294967040  ;;  %v392_v0 = vmov 0   ;;  %v317_v1 = vld [vmem:[#allocation2 + $0x4] ss:$8 sps:$4 sm:$0xff]   ;;  %vm59_vm0 = vcmask 130048   ;;  %v108_v24 = vlaneseq }
  0x1e   :  { %95 = vmatprep.mubr.bf16.mxu0 %v392_v0  ;;  %148 = vmatprep.mubr.bf16.mxu1 %v392_v0  ;;  %v319_v2 = vld [vmem:[#allocation2] ss:$8 sps:$4 sm:$0xff]   ;;  %v48_v3 = vld [vmem:[#allocation5 + $0x4] sm:$0xf]  ;;  %v46_v4 = vld [vmem:[#allocation5] sm:$0xf] }
  0x1f   :  { %316 = vset.pattern.permute.xlu0 %v392_v0  ;;  %77 = vmatprep.subr.bf16.mxu0 %v317_v1  ;;  %v158_v5 = vld [vmem:[#allocation5 + $0x8] sm:$0xf]  ;;  %v213_v6 = vld [vmem:[#allocation5 + $0xc] sm:$0xf]  ;;  %s393_s0 = smov 127   ;;  %v267_v15 = vld [vmem:[%s431_s2] sm:$0xff] }
  0x20   :  { %130 = vmatprep.subr.bf16.mxu1 %v317_v1  ;;  %78 = vmatpush1.bf16.msra.mxu0 %v319_v2  ;;  %s394_s27 = smov 119   ;;  %s395_s28 = smov 118   ;;  %v109_v26 = vand.u32 127, %v108_v24 }
  0x21   :  { %131 = vmatpush1.bf16.msra.mxu1 %v319_v2  ;;  %176 = vmatprep.subr.bf16.mxu0 %v317_v1  ;;  %s396_s2 = smov [#allocation7]  }
  0x22   :  { %231 = vmatprep.subr.bf16.mxu1 %v317_v1  ;;  %vm110_vm1 = vcmp.lt.s32.totalorder %v109_v26, 127  ;;  %vm207_vm2 = vcmp.lt.s32.totalorder %v109_v26, 119  ;;  %vm262_vm3 = vcmp.lt.s32.totalorder %v109_v26, 118  ;;  %s289_s29 = sshll.u32 %s396_s2, 4  ;;  %s290_s29 = int_to_ptr.vmem [resolvable:$true] %s289_s29 }
  0x23   :  { %301 = vmatmul.mubr.msk.bf16.vlgmr.msra.gmra.mxu0 %vm59_vm0, %v48_v3  ;;  %s360_s30 = scalar_lea.vmem %s290_s29, 256  ;;  %p365_p11 = scmp.lt.s32.totalorder %s290_s29, %s290_s29 }
  0x24   :  { %302 = vmatmul.mubr.msk.bf16.vlgmr.msra.gmra.mxu1 %vm59_vm0, %v46_v4  ;;  %177 = vmatpush1.bf16.msra.mxu0 %v319_v2  ;;  %p361_p10 = scmp.ne.s32.totalorder %s290_s29, %s360_s30  ;;  %p366_p12 = scmp.lt.s32.totalorder %s360_s30, %s360_s30 }
  0x25   :  { %232 = vmatpush1.bf16.msra.mxu1 %v319_v2  ;;  %194 = vmatprep.mubr.bf16.mxu0 %v392_v0 }
  0x26   :  { %249 = vmatprep.mubr.bf16.mxu1 %v392_v0  ;;  %p367_p13 = por %p366_p12, %p365_p11 }
  0x28   :  { %p368_p0 = pnand %p367_p13, %p361_p10 }
  0x2b   :  { %303 = vmatmul.mubr.msk.bf16.vlgmr.msra.gmra.mxu0 %vm59_vm0, %v158_v5 }
  0x2c   :  { %304 = vmatmul.mubr.msk.bf16.vlgmr.msra.gmra.mxu1 %vm59_vm0, %v213_v6 }
  0xe3   :  { %v97_v7 = vpop.f32.mrf.mxu0 }
  0xe4   :  { %v150_v8 = vpop.f32.mrf.mxu1  ;;  %104 = vrot.lane.b32.xlu0 %v97_v7, %s393_s0 }
  0xe5   :  { %v99_v9 = vpop.f32.mrf.mxu0 }
  0xe6   :  { %v152_v10 = vpop.f32.mrf.mxu1 }
  0xe7   :  { %v101_v11 = vpop.f32.mrf.mxu0 }
  0xe8   :  { %v154_v12 = vpop.f32.mrf.mxu1  ;;  %106 = vrot.lane.b32.xlu0 %v99_v9, %s393_s0 }
  0xe9   :  { %v102_v13 = vpop.f32.mrf.mxu0 }
  0xea   :  { %v155_v14 = vpop.f32.mrf.mxu1 }
  0xeb   :  { %v196_v16 = vpop.f32.mrf.mxu0 }
  0xec   :  { %v251_v17 = vpop.f32.mrf.mxu1  ;;  %203 = vrot.lane.b32.xlu1 %v196_v16, %s394_s27  ;;  %270 = vperm.xlu0 %316, %v267_v15  }
  0xed   :  { %v198_v18 = vpop.f32.mrf.mxu0 }
  0xee   :  { %v253_v19 = vpop.f32.mrf.mxu1 }
  0xef   :  { %v200_v20 = vpop.f32.mrf.mxu0 }
  0xf0   :  { %v255_v21 = vpop.f32.mrf.mxu1  ;;  %258 = vrot.lane.b32.xlu1 %v251_v17, %s395_s28 }
  0xf1   :  { %v201_v22 = vpop.f32.mrf.mxu0 }
  0xf2   :  { %v256_v23 = vpop.f32.mrf.mxu1 }
  0xf4   :  { %205 = vrot.lane.b32.xlu1 %v198_v18, %s394_s27 }
  0xf8   :  { %260 = vrot.lane.b32.xlu1 %v253_v19, %s395_s28 }
 0x156   :  { %v105_v25 = vpop.permute.xlu0 %104 }
 0x15a   :  { %v107_v28 = vpop.permute.xlu0 %106 }
 0x15b   :  { %v111_v30 = vsel %vm110_vm1, %v105_v25, %v107_v28  ;;  %v112_v31 = vsel %vm110_vm1, %v107_v28, %v105_v25 }
 0x15c   :  { %v151_v35 = vadd.f32 %v150_v8, %v111_v30  ;;  %v153_v36 = vadd.f32 %v152_v10, %v112_v31 }
 0x15e   :  { %v204_v27 = vpop.permute.xlu1 %203 }
 0x162   :  { %v259_v29 = vpop.permute.xlu1 %258 }
 0x166   :  { %v206_v32 = vpop.permute.xlu1 %205 }
 0x167   :  { %v208_v33 = vsel %vm207_vm2, %v204_v27, %v206_v32  ;;  %v209_v34 = vsel %vm207_vm2, %v206_v32, %v204_v27  ;;  %v271_v42 = vpop.permute.xlu0 %270 }
 0x168   :  { %v210_v37 = vadd.f32 %v208_v33, %v151_v35  ;;  %v211_v38 = vadd.f32 %v209_v34, %v153_v36 }
 0x16a   :  { %v261_v39 = vpop.permute.xlu1 %260 }
 0x16b   :  { %v263_v40 = vsel %vm262_vm3, %v259_v29, %v261_v39  ;;  %v264_v41 = vsel %vm262_vm3, %v261_v39, %v259_v29 }
 0x16c   :  { %v265_v43 = vadd.f32 %v263_v40, %v210_v37  ;;  %v266_v44 = vadd.f32 %v264_v41, %v211_v38 }
 0x16e   :  { %v273_v45 = vadd.f32 %v271_v42, %v265_v43  ;;  %v274_v46 = vadd.f32 %v271_v42, %v266_v44 }
 0x170   :  { %vm275_vm4 = vcmp.gt.f32.partialorder %v273_v45, 0.0  ;;  %vm276_vm5 = vcmp.gt.f32.partialorder %v274_v46, 0.0  ;;  %v277_v47 = vmul.f32 0.1, %v273_v45  ;;  %v278_v48 = vmul.f32 0.1, %v274_v46 }
 0x172   :  { %v279_v49 = vsel %vm275_vm4, %v273_v45, %v277_v47  ;;  %v280_v50 = vsel %vm276_vm5, %v274_v46, %v278_v48 }
 0x173   :  { %281 = vst [vmem:[#allocation7] sm:$0xff] %v279_v49  ;;  %282 = vst [vmem:[#allocation7 + $0x8] sm:$0xff] %v280_v50 }
 0x174   :  { %371 = shalt.err (!%p368_p0)
}
 0x175   :  { %292 = dma.vmem_to_hbm [thread:$0]  %s290_s29, 256, %s432_s3, [#allocation4]  }
 0x176   :  { %384 = dma.done.wait [#allocation4], 256  }
 0x177   :  { %385 = vsyncadd [#allocation4], 4294967040 }
 0x178   :  { %296 = vsyncpa [#allocation3], 1 }
 0x179   :  { %297 = vsyncpa [#allocation6], 1 }
 0x17a   :  { %298 = vsyncpa [#allocation4], 1 }

</bundles_post_ra>
